<compile_context>
chip_gen: v6e
topology: v6e:2x2x1
jax: 0.10.0
libtpu: 0.0.40
codegen_flags: <defaults>
</compile_context>

<pallas_src>
import functools

import jax
import jax.numpy as jnp
from jax.experimental import pallas as pl
from jax.experimental.pallas import tpu as pltpu


# --------------------------------------------------------------------------- #
# Kernel
# --------------------------------------------------------------------------- #
def _merge_mse_kernel(cam_ref, gray_ref, alpha_ref, bg_ref, ref_ref,
                      *out_refs, emit_diff, accumulate):
    """One grid step = one (batch element, row-tile) pair.

    cam_ref:   [N]          SMEM scalar-prefetch camera indices (only consumed
                            by the bg/ref index_maps, not by the body).
    gray_ref:  [1, TH, W]   rendered gray channel  (render[..., 0])
    alpha_ref: [1, TH, W]   rendered alpha channel (render[..., 3])
    bg_ref:    [1, TH, W]   clean-plate row tile for this batch's camera
    ref_ref:   [1, TH, W]   reference-image row tile for this batch's camera
    out_refs:  merged_ref [1, TH, W],
               (diff_ref [1, TH, W] iff emit_diff),
               psum_ref: [1, 1, 1]     resident accumulator  (accumulate=True)
                         [1, 1, 1, 1]  per-tile partial sum   (accumulate=False)
    """
    del cam_ref  # consumed by the index_maps only
    if emit_diff:
        merged_ref, diff_ref, psum_ref = out_refs
    else:
        merged_ref, psum_ref = out_refs
        diff_ref = None

    # Upcast to f32 so bf16 inputs are supported with f32 error accumulation.
    gray = gray_ref[0].astype(jnp.float32)
    alpha = alpha_ref[0].astype(jnp.float32)
    bg = bg_ref[0].astype(jnp.float32)
    ref = ref_ref[0].astype(jnp.float32)

    merged = jnp.where(alpha > 0.0, gray, bg)        # _merge_fg_bg
    diff = merged - ref                              # diff_masked (mask = identity)

    merged_ref[0] = merged.astype(merged_ref.dtype)
    if emit_diff:
        diff_ref[0] = diff.astype(diff_ref.dtype)

    tile_sum = jnp.sum(diff * diff)                  # f32 partial sum of sq. err

    if accumulate:
        # Resident per-batch accumulator: h axis is "arbitrary", the psum block
        # index depends only on n, so it stays in VMEM across the row tiles and
        # is written back to HBM once per batch element.
        @pl.when(pl.program_id(1) == 0)
        def _init():
            psum_ref[...] = jnp.zeros_like(psum_ref)

        psum_ref[...] = psum_ref[...] + tile_sum
    else:
        # One tiny partial-sum block per grid step; both grid axes stay
        # "parallel" (v7x megacore when N == 1), combined + scaled in XLA.
        psum_ref[...] = jnp.broadcast_to(tile_sum, psum_ref.shape).astype(jnp.float32)


# --------------------------------------------------------------------------- #
# Tiling / VMEM planning
# --------------------------------------------------------------------------- #
def _row_multiple(itemsizes):
    """Sublane row multiple: 8 for f32, 16 for bf16, 32 for int8/fp8 — driven
    by the narrowest dtype streamed through the kernel (packed-row rule)."""
    min_item = max(1, min(itemsizes))
    return 8 * max(1, 4 // min_item)


def _tpu_vmem_capacity_bytes(default_bytes=64 << 20):
    """Physical VMEM per TensorCore; conservative default = v7x's 64 MiB."""
    try:
        info = pltpu.get_tpu_info()
        cap = int(getattr(info, "vmem_capacity_bytes", 0) or 0)
        if cap > 0:
            return cap
    except Exception:
        pass
    return default_bytes


def _plan_tiling(h, w, itemsizes, row_mult, *, max_tile_bytes=4 << 20,
                 vmem_frac=0.75, max_tile_rows=None):
    """Pick the row-tile height TH and an explicit scoped-VMEM limit.

    itemsizes: itemsize of every full-image operand (inputs AND outputs) that
    streams through VMEM, so the double-buffer budget is exact.
    Returns (tile_rows, vmem_limit_bytes).
    """
    assert h % row_mult == 0, "pad H to the sublane multiple before planning"

    bytes_per_row_all = w * sum(itemsizes)     # all operands, one image row
    bytes_per_row_max = w * max(itemsizes)     # widest single operand, one row

    budget = int(_tpu_vmem_capacity_bytes() * vmem_frac)
    rows_cap = min(
        budget // (2 * bytes_per_row_all),     # 2x: every tile is double-buffered
        max_tile_bytes // bytes_per_row_max,   # per-operand tile cap (~4 MiB)
        h,
    )
    if max_tile_rows is not None:
        rows_cap = min(rows_cap, max_tile_rows)
    rows_cap = max(row_mult, (rows_cap // row_mult) * row_mult)

    tile_rows = row_mult
    for th in range(row_mult, rows_cap + 1, row_mult):
        if h % th == 0:
            tile_rows = th

    needed = 2 * tile_rows * bytes_per_row_all + (2 << 20)   # +2 MiB slack
    vmem_limit = max(min(max(needed, 32 << 20), budget), needed)
    return tile_rows, int(vmem_limit)


# --------------------------------------------------------------------------- #
# Wrapper: fused merge_fg_bg + camera gather + MSE
# --------------------------------------------------------------------------- #
def merge_fg_bg_and_mse(fg_gray, fg_alpha, clean_plates_hw, image_refs_all,
                        cam_indices, *, compute_diff=True, diff_dtype=None,
                        max_tile_rows=None):
    """fg_gray / fg_alpha: [N, H, W] planar render planes;
    clean_plates_hw / image_refs_all: [n_cams, H, W]; cam_indices: int32 [N].

    Returns (image_cur_gray [N,H,W], diff_masked [N,H,W] or None, l_pixel).
    Set diff_dtype=jnp.bfloat16 to halve the viz-only diff write bandwidth."""
    N, H, W = fg_gray.shape
    assert fg_alpha.shape == (N, H, W)
    n_cams, hc, wc = clean_plates_hw.shape
    assert (hc, wc) == (H, W) and image_refs_all.shape == (n_cams, H, W)

    cam_idx = jnp.asarray(cam_indices, dtype=jnp.int32)
    assert cam_idx.shape == (N,)

    out_dtype = fg_gray.dtype
    diff_dtype = out_dtype if diff_dtype is None else jnp.dtype(diff_dtype)

    itemsizes = [fg_gray.dtype.itemsize, fg_alpha.dtype.itemsize,
                 clean_plates_hw.dtype.itemsize, image_refs_all.dtype.itemsize,
                 jnp.dtype(out_dtype).itemsize]
    if compute_diff:
        itemsizes.append(jnp.dtype(diff_dtype).itemsize)
    row_mult = _row_multiple(itemsizes)

    # Pad H to the sublane multiple and W to a multiple of 128 so every tile is
    # (8k, 128k)-aligned and the output stores stay unmasked lane-dense vst.
    # Zero-padded pixels have alpha=0, bg=0, ref=0 -> diff=0 -> no loss bias.
    hp = -(-H // row_mult) * row_mult
    wp = -(-W // 128) * 128

    def _pad(x):
        if x.shape[-2] == hp and x.shape[-1] == wp:
            return x
        return jnp.pad(x, ((0, 0), (0, hp - x.shape[-2]), (0, wp - x.shape[-1])))

    fg_gray_p = _pad(fg_gray)
    fg_alpha_p = _pad(fg_alpha)
    bg_p = _pad(clean_plates_hw)
    ref_p = _pad(image_refs_all)

    th, vmem_limit = _plan_tiling(hp, wp, itemsizes, row_mult,
                                  max_tile_rows=max_tile_rows)
    n_th = hp // th

    # Resident per-batch loss accumulator on the (inner) h axis when it pays
    # off; otherwise per-tile partial sums with both axes megacore-parallel.
    accumulate = (N > 1) and (n_th > 1)

    # per-batch row tile of rendered planes / image outputs
    img_spec = pl.BlockSpec((1, th, wp), lambda n, h, cam: (n, h, 0))
    # camera-indexed row tile of the full per-camera arrays (fused gather, P2)
    cam_spec = pl.BlockSpec((1, th, wp), lambda n, h, cam: (cam[n], h, 0))

    out_shape = [jax.ShapeDtypeStruct((N, hp, wp), out_dtype)]
    out_specs = [img_spec]
    if compute_diff:
        out_shape.append(jax.ShapeDtypeStruct((N, hp, wp), diff_dtype))
        out_specs.append(img_spec)
    if accumulate:
        out_shape.append(jax.ShapeDtypeStruct((N, 1, 1), jnp.float32))
        out_specs.append(pl.BlockSpec((1, 1, 1), lambda n, h, cam: (n, 0, 0)))
        dims = ("parallel", "arbitrary")
    else:
        out_shape.append(jax.ShapeDtypeStruct((N, n_th, 1, 1), jnp.float32))
        out_specs.append(pl.BlockSpec((1, 1, 1, 1), lambda n, h, cam: (n, h, 0, 0)))
        dims = ("parallel", "parallel")

    kernel = functools.partial(_merge_mse_kernel, emit_diff=compute_diff,
                               accumulate=accumulate)

    outs = pl.pallas_call(
        kernel,
        out_shape=tuple(out_shape),
        grid_spec=pltpu.PrefetchScalarGridSpec(
            num_scalar_prefetch=1,
            grid=(N, n_th),
            in_specs=[img_spec, img_spec, cam_spec, cam_spec],
            out_specs=tuple(out_specs),
        ),
        compiler_params=pltpu.CompilerParams(
            dimension_semantics=dims,
            vmem_limit_bytes=vmem_limit),
    )(cam_idx, fg_gray_p, fg_alpha_p, bg_p, ref_p)

    if compute_diff:
        merged_p, diff_p, psum = outs
    else:
        merged_p, psum = outs
        diff_p = None

    def _crop(x):
        return x if (hp == H and wp == W) else x[:, :H, :W]

    merged = _crop(merged_p)
    diff = _crop(diff_p) if diff_p is not None else None

    l_pixel = jnp.sum(psum.astype(jnp.float32)) * (1.0 / float(N * H * W))
    return merged, diff, l_pixel


# --------------------------------------------------------------------------- #
# Model.forward analogue
# --------------------------------------------------------------------------- #
def model_forward(texture_map, render_gray, render_alpha, render_rgba,
                  clean_plates, image_refs, cam_indices, *, compute_diff=True,
                  max_tile_rows=None):
    """JAX analogue of Model.forward(batch_idx, learn_texturemap).

    texture_map:  [1, TH, TW, 1]   learnable parameter (zeros-init when no path).
    render_gray:  [N, H, W]        renderer gray plane  (render[..., 0]).
    render_alpha: [N, H, W]        renderer alpha plane (render[..., 3]).
    render_rgba:  [N, H, W, 4]     full render, viz-only passthrough ('currents').
    clean_plates: [n_cams, H, W, 1]
    image_refs:   [n_cams, H, W]
    cam_indices:  length-N camera indices for this batch.
    """
    # TODO(synk): renderer(meshes, texture_map, cameras) (PyTorch3D rasterizer +
    # TexturedSoftPhongShader) has no clean Pallas equivalent; per perf review
    # the renderer stand-in emits planar gray/alpha planes so the merge/MSE
    # kernel never pays an HBM channel-slice pre-pass.  render_rgba is only
    # forwarded for the 'currents' viz entry and never re-read by the kernel.
    del texture_map

    cam_idx = jnp.asarray(cam_indices, dtype=jnp.int32)
    clean_plates_hw = clean_plates[..., 0]   # drop trailing singleton (layout-free)

    image_cur_gray, diff_masked, l_pixel = merge_fg_bg_and_mse(
        render_gray, render_alpha, clean_plates_hw, image_refs, cam_idx,
        compute_diff=compute_diff, max_tile_rows=max_tile_rows)

    # 'targets' is a visualization output; the loss path gathers the camera
    # tiles inside the kernel via scalar prefetch, so this XLA gather only
    # materializes if the caller actually uses it.
    refs = image_refs[cam_idx]
    if diff_masked is None:
        diff_masked = image_cur_gray - refs   # cheap fused XLA op, viz only

    images_out = {
        "currents_with_bg": image_cur_gray,
        "currents": render_rgba,
        "targets": refs,
        "diff_masked": diff_masked,
    }
    losses = {"pixel": l_pixel, "total": l_pixel}
    return images_out, l_pixel, losses


# --------------------------------------------------------------------------- #
# Demo / self-check
# --------------------------------------------------------------------------- #
if __name__ == "__main__":
    # small shapes consistent with the module
    batch_size = 2          # global batch_size in the script
    n_cams = 16             # cams 'A'..'P'
    image_size = 128        # self.image_size (kept lane-dense; original is larger)
    tex_h = tex_w = 128     # stand-in for texturemap_shape = (1024, 1024, 1)

    key = jax.random.PRNGKey(0)
    k_fg, k_alpha, k_bg, k_ref = jax.random.split(key, 4)

    # learnable texture map parameter: zeros, as in __init__ when no path given
    texture_map = jnp.zeros((1, tex_h, tex_w, 1), dtype=jnp.float32)

    # synthetic renderer output: planar gray + alpha planes; the RGBA stack is
    # built only for the viz dict + reference check (not on the loss hot path).
    fg_gray = jax.random.uniform(k_fg, (batch_size, image_size, image_size),
                                 dtype=jnp.float32)
    fg_alpha = (jax.random.uniform(k_alpha, (batch_size, image_size, image_size),
                                   dtype=jnp.float32) > 0.5).astype(jnp.float32)
    fg_render = jnp.stack([fg_gray, fg_gray, fg_gray, fg_alpha], axis=-1)

    clean_plates = jax.random.uniform(
        k_bg, (n_cams, image_size, image_size, 1), dtype=jnp.float32)
    image_refs = jax.random.uniform(
        k_ref, (n_cams, image_size, image_size), dtype=jnp.float32)

    batch_idx = 0
    cam_indices = list(range(batch_idx * batch_size,
                             batch_idx * batch_size + batch_size))
    cam_arr = jnp.asarray(cam_indices, dtype=jnp.int32)

    # plain-JAX reference (mirrors the PyTorch forward)
    bgs = clean_plates[cam_arr][..., 0]
    refs = image_refs[cam_arr]
    merged_expect = jnp.where(fg_render[..., 3] > 0.0, fg_render[..., 0], bgs)
    diff_expect = merged_expect - refs
    loss_expect = jnp.mean(diff_expect ** 2)

    # Run 1: default tile planning (largest tile; per-tile psum path, n_th == 1).
    images_out, loss, losses = model_forward(
        texture_map, fg_gray, fg_alpha, fg_render, clean_plates, image_refs,
        cam_indices)
    jax.block_until_ready(loss)
    jax.block_until_ready(images_out["currents_with_bg"])
    assert jnp.allclose(images_out["currents_with_bg"], merged_expect, atol=1e-6)
    assert jnp.allclose(images_out["diff_masked"], diff_expect, atol=1e-6)
    assert jnp.allclose(images_out["targets"], refs, atol=1e-6)
    assert jnp.allclose(loss, loss_expect, rtol=1e-5, atol=1e-6)
    assert jnp.allclose(losses["total"], loss_expect, rtol=1e-5, atol=1e-6)

    # Run 2: force several row tiles so the resident-accumulator psum path
    # (h axis "arbitrary", one scalar flushed per batch element) is exercised.
    images_out2, loss2, _ = model_forward(
        texture_map, fg_gray, fg_alpha, fg_render, clean_plates, image_refs,
        cam_indices, max_tile_rows=32)
    jax.block_until_ready(loss2)
    assert jnp.allclose(images_out2["currents_with_bg"], merged_expect, atol=1e-6)
    assert jnp.allclose(images_out2["diff_masked"], diff_expect, atol=1e-6)
    assert jnp.allclose(loss2, loss_expect, rtol=1e-5, atol=1e-6)

    # Run 3: unaligned H / W (padded to sublane/lane multiples in the wrapper,
    # cropped back) and N == 1 (per-tile psum, both grid axes "parallel").
    h3, w3, n3 = 44, 72, 1
    g3 = jax.random.uniform(jax.random.PRNGKey(1), (n3, h3, w3), jnp.float32)
    a3 = (jax.random.uniform(jax.random.PRNGKey(2), (n3, h3, w3), jnp.float32)
          > 0.5).astype(jnp.float32)
    bg3 = jax.random.uniform(jax.random.PRNGKey(3), (n_cams, h3, w3), jnp.float32)
    rf3 = jax.random.uniform(jax.random.PRNGKey(4), (n_cams, h3, w3), jnp.float32)
    cam3 = jnp.asarray([5], dtype=jnp.int32)
    merged3, diff3, loss3 = merge_fg_bg_and_mse(g3, a3, bg3, rf3, cam3)
    jax.block_until_ready(loss3)
    m3_expect = jnp.where(a3 > 0.0, g3, bg3[cam3])
    d3_expect = m3_expect - rf3[cam3]
    assert jnp.allclose(merged3, m3_expect, atol=1e-6)
    assert jnp.allclose(diff3, d3_expect, atol=1e-6)
    assert jnp.allclose(loss3, jnp.mean(d3_expect ** 2), rtol=1e-5, atol=1e-6)

    print("KERNEL_OK")
</pallas_src>

<mosaic_0001>
module attributes {stable_mosaic.version = 11 : i64} {
  func.func @_merge_mse_kernel(%arg0: i32, %arg1: i32, %arg2: memref<2xi32, #tpu.memory_space<smem>>, %arg3: memref<1x128x128xf32, #tpu.memory_space<vmem>>, %arg4: memref<1x128x128xf32, #tpu.memory_space<vmem>>, %arg5: memref<1x128x128xf32, #tpu.memory_space<vmem>>, %arg6: memref<1x128x128xf32, #tpu.memory_space<vmem>>, %arg7: memref<1x128x128xf32, #tpu.memory_space<vmem>>, %arg8: memref<1x128x128xf32, #tpu.memory_space<vmem>>, %arg9: memref<1x1x1x1xf32, #tpu.memory_space<vmem>>) attributes {dimension_semantics = [#tpu.dimension_semantics<parallel>, #tpu.dimension_semantics<parallel>], iteration_bounds = array<i64: 2, 1>, scalar_prefetch = 1 : i64, scratch_operands = 0 : i64, tpu.core_type = #tpu.core_type<tc>, window_params = [{transform_indices = @transform_0, window_bounds = array<i64: 1, 128, 128>}, {transform_indices = @transform_1, window_bounds = array<i64: 1, 128, 128>}, {transform_indices = @transform_2, window_bounds = array<i64: 1, 128, 128>}, {transform_indices = @transform_3, window_bounds = array<i64: 1, 128, 128>}, {transform_indices = @transform_4, window_bounds = array<i64: 1, 128, 128>}, {transform_indices = @transform_5, window_bounds = array<i64: 1, 128, 128>}, {transform_indices = @transform_6, window_bounds = array<i64: 1, 1, 1, 1>}]} {
    %c0 = arith.constant 0 : index
    %c0_0 = arith.constant 0 : index
    %c0_1 = arith.constant 0 : index
    %0 = vector.load %arg3[%c0, %c0_0, %c0_1] : memref<1x128x128xf32, #tpu.memory_space<vmem>>, vector<1x128x128xf32>
    %1 = vector.shape_cast %0 : vector<1x128x128xf32> to vector<128x128xf32>
    %c0_2 = arith.constant 0 : index
    %c0_3 = arith.constant 0 : index
    %c0_4 = arith.constant 0 : index
    %2 = vector.load %arg4[%c0_2, %c0_3, %c0_4] : memref<1x128x128xf32, #tpu.memory_space<vmem>>, vector<1x128x128xf32>
    %3 = vector.shape_cast %2 : vector<1x128x128xf32> to vector<128x128xf32>
    %c0_5 = arith.constant 0 : index
    %c0_6 = arith.constant 0 : index
    %c0_7 = arith.constant 0 : index
    %4 = vector.load %arg5[%c0_5, %c0_6, %c0_7] : memref<1x128x128xf32, #tpu.memory_space<vmem>>, vector<1x128x128xf32>
    %5 = vector.shape_cast %4 : vector<1x128x128xf32> to vector<128x128xf32>
    %c0_8 = arith.constant 0 : index
    %c0_9 = arith.constant 0 : index
    %c0_10 = arith.constant 0 : index
    %6 = vector.load %arg6[%c0_8, %c0_9, %c0_10] : memref<1x128x128xf32, #tpu.memory_space<vmem>>, vector<1x128x128xf32>
    %7 = vector.shape_cast %6 : vector<1x128x128xf32> to vector<128x128xf32>
    %cst = arith.constant 0.000000e+00 : f32
    %8 = vector.broadcast %cst : f32 to vector<128x128xf32>
    %9 = arith.cmpf ogt, %3, %8 : vector<128x128xf32>
    %10 = arith.select %9, %1, %5 : vector<128x128xi1>, vector<128x128xf32>
    %11 = arith.subf %10, %7 : vector<128x128xf32>
    %c0_11 = arith.constant 0 : index
    %c0_12 = arith.constant 0 : index
    %c0_13 = arith.constant 0 : index
    %12 = vector.load %arg7[%c0_11, %c0_12, %c0_13] : memref<1x128x128xf32, #tpu.memory_space<vmem>>, vector<1x128x128xf32>
    %13 = vector.shape_cast %12 : vector<1x128x128xf32> to vector<128x128xf32>
    %14 = vector.shape_cast %10 : vector<128x128xf32> to vector<1x128x128xf32>
    tpu.vector_store %arg7[%c0_11, %c0_12, %c0_13], %14 {strides = array<i32>} : memref<1x128x128xf32, #tpu.memory_space<vmem>>, vector<1x128x128xf32>,
    %c0_14 = arith.constant 0 : index
    %c0_15 = arith.constant 0 : index
    %c0_16 = arith.constant 0 : index
    %15 = vector.load %arg8[%c0_14, %c0_15, %c0_16] : memref<1x128x128xf32, #tpu.memory_space<vmem>>, vector<1x128x128xf32>
    %16 = vector.shape_cast %15 : vector<1x128x128xf32> to vector<128x128xf32>
    %17 = vector.shape_cast %11 : vector<128x128xf32> to vector<1x128x128xf32>
    tpu.vector_store %arg8[%c0_14, %c0_15, %c0_16], %17 {strides = array<i32>} : memref<1x128x128xf32, #tpu.memory_space<vmem>>, vector<1x128x128xf32>,
    %18 = arith.mulf %11, %11 : vector<128x128xf32>
    %19 = vector.shape_cast %18 : vector<128x128xf32> to vector<1x128x128xf32>
    %cst_17 = arith.constant dense<0.000000e+00> : vector<1xf32>
    %20 = vector.multi_reduction <add>, %19, %cst_17 [1, 2] : vector<1x128x128xf32> to vector<1xf32>
    %21 = vector.shape_cast %20 : vector<1xf32> to vector<1x1x1xf32>
    %22 = vector.extract %21[0, 0, 0] : f32 from vector<1x1x1xf32>
    %23 = vector.broadcast %22 : f32 to vector<1x1x1x1xf32>
    %c0_18 = arith.constant 0 : index
    %c0_19 = arith.constant 0 : index
    %c0_20 = arith.constant 0 : index
    %c0_21 = arith.constant 0 : index
    %24 = vector.load %arg9[%c0_18, %c0_19, %c0_20, %c0_21] : memref<1x1x1x1xf32, #tpu.memory_space<vmem>>, vector<1x1x1x1xf32>
    tpu.vector_store %arg9[%c0_18, %c0_19, %c0_20, %c0_21], %23 {strides = array<i32>} : memref<1x1x1x1xf32, #tpu.memory_space<vmem>>, vector<1x1x1x1xf32>,
    return
  }
  func.func @transform_0(%arg0: i32, %arg1: i32, %arg2: memref<2xi32, #tpu.memory_space<smem>>) -> (i32, i32, i32) {
    %c0_i32 = arith.constant 0 : i32
    %c0_i32_0 = arith.constant 0 : i32
    return %arg0, %arg1, %c0_i32 : i32, i32, i32
  }
  func.func @transform_1(%arg0: i32, %arg1: i32, %arg2: memref<2xi32, #tpu.memory_space<smem>>) -> (i32, i32, i32) {
    %c0_i32 = arith.constant 0 : i32
    %c0_i32_0 = arith.constant 0 : i32
    return %arg0, %arg1, %c0_i32 : i32, i32, i32
  }
  func.func @transform_2(%arg0: i32, %arg1: i32, %arg2: memref<2xi32, #tpu.memory_space<smem>>) -> (i32, i32, i32) {
    %0 = arith.index_cast %arg0 : i32 to index
    %1 = memref.load %arg2[%0] : memref<2xi32, #tpu.memory_space<smem>>
    %c0_i32 = arith.constant 0 : i32
    %c0_i32_0 = arith.constant 0 : i32
    return %1, %arg1, %c0_i32 : i32, i32, i32
  }
  func.func @transform_3(%arg0: i32, %arg1: i32, %arg2: memref<2xi32, #tpu.memory_space<smem>>) -> (i32, i32, i32) {
    %0 = arith.index_cast %arg0 : i32 to index
    %1 = memref.load %arg2[%0] : memref<2xi32, #tpu.memory_space<smem>>
    %c0_i32 = arith.constant 0 : i32
    %c0_i32_0 = arith.constant 0 : i32
    return %1, %arg1, %c0_i32 : i32, i32, i32
  }
  func.func @transform_4(%arg0: i32, %arg1: i32, %arg2: memref<2xi32, #tpu.memory_space<smem>>) -> (i32, i32, i32) {
    %c0_i32 = arith.constant 0 : i32
    %c0_i32_0 = arith.constant 0 : i32
    return %arg0, %arg1, %c0_i32 : i32, i32, i32
  }
  func.func @transform_5(%arg0: i32, %arg1: i32, %arg2: memref<2xi32, #tpu.memory_space<smem>>) -> (i32, i32, i32) {
    %c0_i32 = arith.constant 0 : i32
    %c0_i32_0 = arith.constant 0 : i32
    return %arg0, %arg1, %c0_i32 : i32, i32, i32
  }
  func.func @transform_6(%arg0: i32, %arg1: i32, %arg2: memref<2xi32, #tpu.memory_space<smem>>) -> (i32, i32, i32, i32) {
    %c0_i32 = arith.constant 0 : i32
    %c0_i32_0 = arith.constant 0 : i32
    %c0_i32_1 = arith.constant 0 : i32
    return %arg0, %arg1, %c0_i32, %c0_i32_0 : i32, i32, i32, i32
  }
}

</mosaic_0001>

<bundles_post_ra>
// kernel: tpu_custom_call.1
= control target key start
LH: loop header
LB: loop body
LE: loop exit
PB: predicated region body
PF: predicated region fallthrough
CT: control target
= control target key end

     0   :  { %s1399_s24 = smov [#allocation3]   ;;  %s2053_s0 = inlined_call_operand.hbm [shape: s32[2], index: 0, kind: input, shape index: {}]   ;;  %s2054_s1 = inlined_call_operand.hbm [shape: f32[2,128,128], index: 1, kind: input, shape index: {}]   ;;  %s2055_s2 = inlined_call_operand.hbm [shape: f32[2,128,128], index: 2, kind: input, shape index: {}]   ;;  %s2056_s3 = inlined_call_operand.hbm [shape: f32[16,128,128], index: 3, kind: input, shape index: {}]   ;;  %s2057_s4 = inlined_call_operand.hbm [shape: f32[16,128,128], index: 4, kind: input, shape index: {}]   ;;  %s2058_s5 = inlined_call_operand.hbm [shape: f32[2,128,128], index: 5, kind: output, shape index: {0}]   ;;  %s2059_s6 = inlined_call_operand.hbm [shape: f32[2,128,128], index: 6, kind: output, shape index: {1}]   ;;  %s2060_s7 = inlined_call_operand.vmem [shape: f32[2,1,1,1], index: 7, kind: output, shape index: {2}]  }
   0x1   :  { %2085 = sst [smem:[#allocation34_spill]] %s2054_s1 }
   0x2   :  { %2086 = sst [smem:[#allocation35_spill]] %s2055_s2 }
   0x3   :  { %2087 = sst [smem:[#allocation36_spill]] %s2058_s5 }
   0x4   :  { %2088 = sst [smem:[#allocation37_spill]] %s2059_s6 }
   0x5   :  { %2089 = sst [smem:[#allocation38_spill]] %s2060_s7 }
   0x6   :  { %14 = dma.hbm_to_smem %s2053_s0, 16, %s1399_s24, [#allocation2] }
   0x7   :  { %1325 = dma.done.wait [#allocation2], 16 }
   0x8   :  { %1326 = vsyncadd [#allocation2], 4294967280 }
   0x9   :  { %16 = sfence }
   0xa   :  { %17 = vsyncpa [#allocation5], 0 }
   0xb   :  { %19 = vsyncpa [#allocation5 + $0x1], 0 }
   0xc   :  { %20 = vsyncpa [#allocation8], 0 }
   0xd   :  { %22 = vsyncpa [#allocation8 + $0x1], 0 }
   0xe   :  { %23 = vsyncpa [#allocation11], 0 }
   0xf   :  { %25 = vsyncpa [#allocation11 + $0x1], 0 }
  0x10   :  { %26 = vsyncpa [#allocation6], 0 }
  0x11   :  { %28 = vsyncpa [#allocation6 + $0x1], 0 }
  0x12   :  { %29 = vsyncpa [#allocation14], 0 }
  0x13   :  { %31 = vsyncpa [#allocation14 + $0x1], 0  ;;  %s1453_s27 = smov 0   ;;  %s1455_s28 = smov 0  }
  0x14   :  { %s1457_s29 = smov 0   ;;  %s1459_s0 = smov 0  }
  0x15   :  { %s1461_s30 = smov 0   ;;  %s1463_s8 = smov 0  }
  0x16   :  { %s1465_s9 = smov 0   ;;  %s1467_s10 = smov 0  }
  0x17   :  { %s1469_s11 = smov 0   ;;  %s1471_s12 = smov 0  }
  0x18   :  { %s1473_s13 = smov 0   ;;  %s1475_s14 = smov 0  }
  0x19 LB: > { %2090 = sst [smem:[#allocation26_spill]] %s1377_s9  ;;  %s1514_s15 = sadd.s32 4294967295, %s1397_s14   ;;  %s1397_s14 = sphi %s1475_s14, %s37_s14   ;;  %s1393_s13 = sphi %s1473_s13, %s2158_s13   ;;  %s1389_s12 = sphi %s1471_s12, %s2157_s12   ;;  %s1385_s11 = sphi %s1469_s11, %s2156_s11   ;;  %s1381_s10 = sphi %s1467_s10, %s2155_s10   ;;  %s1377_s9 = sphi %s1465_s9, %s2146_s9   ;;  %s1373_s8 = sphi %s1463_s8, %s2154_s8   ;;  %s1369_s30 = sphi %s1461_s30, %s2153_s30   ;;  %s1365_s0 = sphi %s1459_s0, %s2152_s0   ;;  %s1361_s29 = sphi %s1457_s29, %s2151_s29   ;;  %s1357_s28 = sphi %s1455_s28, %s2150_s28   ;;  %s1353_s27 = sphi %s1453_s27, %s2149_s27  }
  0x1a   : > { %2091 = sst [smem:[#allocation27_spill]] %s1381_s10  ;;  %s924_s16 = sadd.s32 4294967294, %s1397_s14  }
  0x1b   : > { %2092 = sst [smem:[#allocation28_spill]] %s1389_s12  ;;  %s49_s17 = sadd.s32 1, %s1393_s13 }
  0x1c   : > { %s58_s18 = sadd.s32 1, %s1385_s11  ;;  %p51_p0 = scmp.ge.s32.totalorder %s49_s17, 2 }
  0x1d   : > { %p65_p1 = scmp.ne.s32.totalorder %s1385_s11, %s1381_s10  ;;  %p2070_p2 = scmp.eq.s32.totalorder %s1397_s14, 0 }
  0x1e   : > { %p71_p3 = scmp.ne.s32.totalorder %s1381_s10, %s1377_s9  ;;  %s2160_s17 = smov (%p51_p0, %s49_s17), 0 }
  0x1f   : > { %2093 = sst [smem:[#allocation29_spill]] %s2160_s17  ;;  %p1528_p4 = por %p2070_p2, %p65_p1 }
  0x20   : > { %p2069_p5 = scmp.eq.s32.totalorder %s1514_s15, 0  ;;  %s53_s20 = ssub.s32 %s1393_s13, %s2160_s17 }
  0x21   : > { %p185_p6 = scmp.eq.s32.totalorder %s1514_s15, 1  ;;  %p56_p7 = scmp.eq.s32.totalorder %s53_s20, 0 }
  0x22   : > { %p1538_p8 = por %p2069_p5, %p71_p3  ;;  %p191_p10 = scmp.eq.s32.totalorder %s924_s16, 1 }
  0x23   : > { %p1542_p9 = por %p185_p6, %p65_p1  ;;  %p2068_p13 = scmp.lt.s32.totalorder %s1397_s14, 2 }
  0x24   : > { %s2095_s21 = scalar_select %p1538_p8, 1, 0 }
  0x25   : > { %s2097_s22 = scalar_select %p1542_p9, 1, 0 }
  0x26   : > { %2096 = sst [smem:[#allocation30_spill]] %s2095_s21  ;;  %p1549_p11 = por %p191_p10, %p71_p3 }
  0x27   : > { %2098 = sst [smem:[#allocation31_spill]] %s2097_s22  ;;  %s2064_s25 = sand.u32 1, %s1385_s11  }
  0x28   : > { %s1547_s23 = scalar_select %p56_p7, %s1385_s11, %s58_s18  }
  0x29   : > { %s2100_s24 = scalar_select %p1549_p11, 1, 0 }
  0x2a   : > { %2099 = sst [smem:[#allocation32_spill]] %s1547_s23  ;;  %s1558_s26 = sshll.u32 %s2064_s25, 7 }
  0x2b   : > { %2101 = sst [smem:[#allocation33_spill]] %s2100_s24  ;;  %s954_s20 = sshll.u32 %s1393_s13, 11 }
  0x2c   : > { %p1565_p0 = pnand %p2068_p13, %p1528_p4  ;;  %s290_s16 = sand.u32 1, %s1397_s14  }
  0x2d   : > { %s2103_s2 = sld [smem:[#allocation35_spill]]  ;;  %s294_s7 = scalar_lea.vmem [#allocation7], %s1558_s26 }
  0x2e   : > { %s303_s6 = sshll.u32 %s294_s7, 4  ;;  %p939_p1 = scmp.ge.s32.totalorder %s1397_s14, 1  ;;  %s304_s6 = int_to_ptr.vmem [resolvable:$true] %s303_s6 }
  0x2f   : > { %p359_p3 = scmp.lt.s32.totalorder %s1397_s14, 3  ;;  %s1578_s25 = scalar_lea.sflag [#allocation8], %s290_s16 }
  0x30   : > { %p1115_p4 = pneg %p1565_p0  ;;  %s1126_s19 = scalar_lea.vmem %s304_s6, 2048 }
  0x31   : > { %p1127_p6 = scmp.ne.s32.totalorder %s304_s6, %s1126_s19  ;;  %s1400_s5 = smov [#allocation7]  }
  0x32   : > { %s1131_s22 = sshll.u32 %s1400_s5, 4  ;;  %s1132_s22 = int_to_ptr.vmem [resolvable:$false] %s1131_s22 }
  0x33   : > { %s302_s24 = scalar_lea.hbm %s2103_s2, %s954_s20  ;;  %p1129_p7 = pnand %p1127_p6, %p1115_p4 }
  0x34   : > { %s1133_s23 = scalar_lea.vmem %s1132_s22, 4096  ;;  %p1134_p12 = scmp.lt.s32.totalorder %s304_s6, %s1132_s22 }
  0x35   : > { %p1130_p10 = pneg %p1129_p7  ;;  %p1135_p13 = scmp.lt.s32.totalorder %s1133_s23, %s1126_s19 }
  0x37   : > { %p1136_p5 = por %p1135_p13, %p1134_p12 }
  0x39   : > { %p1137_p2 = pnand %p1136_p5, %p1130_p10 }
  0x3b   : > { %1140 = shalt.err (!%p1137_p2)
}
  0x3c   : > { %s2075_s7 = smov 128   ;;  %s2078_s16 = smov 8  }
  0x3d   : > { %984 = dma.hbm_to_vmem [thread:$0]  (!%p1565_p0), %s302_s24, 2048, %s304_s6, %s1578_s25, %s2075_s7, %s2075_s7, %s2078_s16  }
  0x3e   : > { %p1595_p12 = pnand %p939_p1, %p359_p3  ;;  %s2105_s1 = sld [smem:[#allocation34_spill]] }
  0x3f   : > { %s271_s23 = scalar_lea.vmem [#allocation4], %s1558_s26  ;;  %s2106_s12 = sand.u32 1, %s1385_s11  }
  0x40   : > { %s2104_s5 = scalar_select %p1595_p12, 1, 0 }
  0x41   : > { %s280_s2 = sshll.u32 %s271_s23, 4  ;;  %s268_s21 = scalar_lea.sflag [#allocation5], %s2106_s12  ;;  %s281_s2 = int_to_ptr.vmem [resolvable:$true] %s280_s2 }
  0x42   : > { %s1154_s10 = scalar_lea.vmem %s281_s2, 2048  ;;  %s1403_s6 = smov [#allocation4]  }
  0x43   : > { %p1155_p2 = scmp.ne.s32.totalorder %s281_s2, %s1154_s10  ;;  %s1159_s24 = sshll.u32 %s1403_s6, 4  ;;  %s1160_s24 = int_to_ptr.vmem [resolvable:$false] %s1159_s24 }
  0x44   : > { %s279_s19 = scalar_lea.hbm %s2105_s1, %s954_s20  ;;  %s1161_s7 = scalar_lea.vmem %s1160_s24, 4096 }
  0x45   : > { %p1157_p5 = pnand %p1155_p2, %p1115_p4  ;;  %p1162_p1 = scmp.lt.s32.totalorder %s281_s2, %s1160_s24 }
  0x46   : > { %p1163_p3 = scmp.lt.s32.totalorder %s1161_s7, %s1154_s10 }
  0x47   : > { %p1158_p13 = pneg %p1157_p5 }
  0x48   : > { %p1164_p6 = por %p1163_p3, %p1162_p1 }
  0x4a   : > { %p1165_p7 = pnand %p1164_p6, %p1158_p13 }
  0x4c   : > { %1168 = shalt.err (!%p1165_p7)
}
  0x4d   : > { %s2107_s26 = smov 128   ;;  %s109_s10 = sld [smem:[#allocation3 + %s1393_s13]] }
  0x4e   : > { %981 = dma.hbm_to_vmem [thread:$0]  (!%p1565_p0), %s279_s19, 2048, %s281_s2, %s268_s21, %s2107_s26, %s2107_s26, %s2078_s16  }
  0x4f   : > { %s110_s12 = sld [smem:[#allocation3 + %s2160_s17]]  ;;  %p123_p4 = scmp.ne.s32.totalorder %s1373_s8, %s1369_s30 }
  0x50   : > { %p129_p10 = scmp.ne.s32.totalorder %s1369_s30, %s1365_s0  ;;  %s315_s9 = sand.u32 1, %s1373_s8  }
  0x51   : > { %p2108_p2 = scmp.eq.s32.totalorder %s1397_s14, 0  ;;  %s933_s7 = sshll.u32 %s315_s9, 7 }
  0x52   : > { %p2110_p0 = scmp.eq.s32.totalorder %s1514_s15, 0  ;;  %s116_s18 = sadd.s32 1, %s1373_s8 }
  0x53   : > { %p1624_p5 = por %p123_p4, %p2108_p2  ;;  %s317_s19 = scalar_lea.vmem [#allocation9], %s933_s7 }
  0x54   : > { %p1630_p13 = por %p129_p10, %p2110_p0  ;;  %s327_s23 = sshll.u32 %s317_s19, 4  ;;  %s1658_s23 = int_to_ptr.vmem [resolvable:$true] %s327_s23 }
  0x55   : > { %s964_s0 = scalar_select %p1624_p5, [#allocation3], [#allocation15] }
  0x56   : > { %s2111_s2 = scalar_select %p1630_p13, 1, 0 }
  0x57   : > { %s965_s21 = scalar_select %p1624_p5, %s1393_s13, 0 }
  0x58   : > { %s111_s22 = ssub.s32 %s109_s10, %s110_s12  ;;  %p2112_p3 = scmp.lt.s32.totalorder %s1397_s14, 2 }
  0x59   : > { %p114_p1 = scmp.eq.s32.totalorder %s111_s22, 0  ;;  %s1656_s12 = sld [smem:[#allocation3 + %s1393_s13]] }
  0x5a   : > { %s2162_s0 = smov (!%p2112_p3, %s964_s0), [#allocation17]  ;;  %p2113_p6 = pmov %p2112_p3 }
  0x5b   : > { %s1643_s6 = scalar_select %p114_p1, %s1373_s8, %s116_s18  }
  0x5c   : > { %s2164_s21 = smov (!%p2113_p6, %s965_s21), 0  ;;  %p2114_p7 = pmov %p2112_p3 }
  0x5d   : > { %s318_s10 = sld [smem:[%s2162_s0 + %s2164_s21]]  ;;  %p153_p10 = scmp.ne.s32.totalorder %s1361_s29, %s1357_s28 }
  0x5e   : > { %p1651_p4 = pnand %p2114_p7, %p1624_p5  ;;  %s1661_s9 = sld [smem:[#allocation3 + %s2160_s17]] }
  0x5f   : > { %p2116_p5 = pmov %p2108_p2  ;;  %s1174_s18 = scalar_lea.hbm %s2056_s3, 32768 }
  0x60   : > { %p1171_p3 = pneg %p1651_p4 }
  0x61   : > { %p1675_p0 = por %p153_p10, %p2116_p5 }
  0x63   : > { %s956_s7 = sshll.u32 %s318_s10, 11 }
  0x64   : > { %s1671_s20 = scalar_lea.hbm %s2056_s3, %s956_s7 }
  0x65   : > { %s2117_s0 = scalar_select %p1675_p0, 1, 0 }
  0x66   : > { %s1169_s21 = scalar_lea.hbm %s1671_s20, 2048  ;;  %p1175_p2 = scmp.lt.s32.totalorder %s1671_s20, %s2056_s3 }
  0x67   : > { %p1170_p1 = scmp.ne.s32.totalorder %s1671_s20, %s1169_s21  ;;  %p1176_p11 = scmp.lt.s32.totalorder %s1174_s18, %s1169_s21 }
  0x69   : > { %p1172_p6 = pnand %p1171_p3, %p1170_p1  ;;  %p1177_p9 = por %p1176_p11, %p1175_p2 }
  0x6b   : > { %p1173_p7 = pneg %p1172_p6 }
  0x6d   : > { %p1178_p10 = pnand %p1177_p9, %p1173_p7 }
  0x6f   : > { %1181 = shalt.err (!%p1178_p10)
}
  0x70   : > { %s1182_s16 = scalar_lea.vmem %s1658_s23, 2048  ;;  %s1404_s1 = smov [#allocation9]  }
  0x71   : > { %p1183_p5 = scmp.ne.s32.totalorder %s1658_s23, %s1182_s16  ;;  %s1187_s17 = sshll.u32 %s1404_s1, 4  ;;  %s1188_s17 = int_to_ptr.vmem [resolvable:$false] %s1187_s17 }
  0x72   : > { %s1189_s22 = scalar_lea.vmem %s1188_s17, 4096  ;;  %p1190_p6 = scmp.lt.s32.totalorder %s1658_s23, %s1188_s17 }
  0x73   : > { %p1185_p13 = pnand %p1183_p5, %p1171_p3  ;;  %p1191_p8 = scmp.lt.s32.totalorder %s1189_s22, %s1182_s16 }
  0x75   : > { %p1186_p1 = pneg %p1185_p13  ;;  %p1192_p12 = por %p1191_p8, %p1190_p6 }
  0x77   : > { %p1193_p0 = pnand %p1192_p12, %p1186_p1 }
  0x79   : > { %1196 = shalt.err (!%p1193_p0)
}
  0x7a   : > { %s2118_s21 = smov 8   ;;  %p2119_p8 = scmp.eq.s32.totalorder %s1514_s15, 0 }
  0x7b   : > { %989 = dma.hbm_to_vmem [thread:$0]  (!%p1651_p4), %s1671_s20, 2048, %s1658_s23, %s1578_s25, %s2107_s26, %s2107_s26, %s2118_s21  }
  0x7c   : > { %p2120_p9 = scmp.ne.s32.totalorder %s1357_s28, %s1353_s27  ;;  %s141_s17 = ssub.s32 %s1656_s12, %s1661_s9 }
  0x7d   : > { %s146_s16 = sadd.s32 1, %s1361_s29  ;;  %p144_p12 = scmp.eq.s32.totalorder %s141_s17, 0 }
  0x7e   : > { %p1706_p11 = por %p2120_p9, %p2119_p8  ;;  %s2122_s24 = sand.u32 1, %s1361_s29  }
  0x7f   : > { %s936_s10 = sshll.u32 %s2122_s24, 7  ;;  %p2123_p13 = scmp.ne.s32.totalorder %s2117_s0, 0 }
  0x80   : > { %s2121_s1 = scalar_select %p1706_p11, 1, 0 }
  0x81   : > { %s967_s18 = scalar_select %p2123_p13, [#allocation3], [#allocation16] }
  0x82   : > { %s1718_s7 = scalar_select %p144_p12, %s1361_s29, %s146_s16  }
  0x83   : > { %s968_s19 = scalar_select %p2123_p13, %s1393_s13, 0 }
  0x84   : > { %p2124_p2 = scmp.lt.s32.totalorder %s1397_s14, 2  ;;  %s341_s23 = scalar_lea.vmem [#allocation10], %s936_s10 }
  0x85   : > { %s351_s12 = sshll.u32 %s341_s23, 4  ;;  %s2128_s16 = smov %s2122_s24  ;;  %s1735_s12 = int_to_ptr.vmem [resolvable:$true] %s351_s12 }
  0x86   : > { %s2166_s18 = smov (!%p2124_p2, %s967_s18), [#allocation18]  ;;  %p2125_p4 = pmov %p2124_p2 }
  0x87   : > { %p2126_p0 = pmov %p2124_p2  ;;  %s1744_s0 = scalar_lea.sflag [#allocation11], %s2128_s16 }
  0x88   : > { %s2168_s19 = smov (!%p2125_p4, %s968_s19), 0 }
  0x89   : > { %p1731_p3 = pnand %p2126_p0, %p2123_p13  ;;  %s342_s25 = sld [smem:[%s2166_s18 + %s2168_s19]] }
  0x8a   : > { %s1202_s19 = scalar_lea.hbm %s2057_s4, 32768 }
  0x8b   : > { %p1199_p10 = pneg %p1731_p3 }
  0x8f   : > { %s957_s9 = sshll.u32 %s342_s25, 11 }
  0x90   : > { %s1740_s17 = scalar_lea.hbm %s2057_s4, %s957_s9 }
  0x91   : > { %s1197_s24 = scalar_lea.hbm %s1740_s17, 2048  ;;  %p1203_p6 = scmp.lt.s32.totalorder %s1740_s17, %s2057_s4 }
  0x92   : > { %p1198_p7 = scmp.ne.s32.totalorder %s1740_s17, %s1197_s24  ;;  %p1204_p8 = scmp.lt.s32.totalorder %s1202_s19, %s1197_s24 }
  0x94   : > { %p1200_p5 = pnand %p1199_p10, %p1198_p7  ;;  %p1205_p9 = por %p1204_p8, %p1203_p6 }
  0x96   : > { %p1201_p1 = pneg %p1200_p5 }
  0x98   : > { %p1206_p12 = pnand %p1205_p9, %p1201_p1 }
  0x9a   : > { %1209 = shalt.err (!%p1206_p12)
}
  0x9b   : > { %s1210_s9 = scalar_lea.vmem %s1735_s12, 2048  ;;  %s1405_s20 = smov [#allocation10]  }
  0x9c   : > { %p1211_p13 = scmp.ne.s32.totalorder %s1735_s12, %s1210_s9  ;;  %s1215_s22 = sshll.u32 %s1405_s20, 4  ;;  %s1216_s22 = int_to_ptr.vmem [resolvable:$false] %s1215_s22 }
  0x9d   : > { %s1217_s16 = scalar_lea.vmem %s1216_s22, 4096  ;;  %p1218_p0 = scmp.lt.s32.totalorder %s1735_s12, %s1216_s22 }
  0x9e   : > { %p1213_p2 = pnand %p1211_p13, %p1199_p10  ;;  %p1219_p7 = scmp.lt.s32.totalorder %s1217_s16, %s1210_s9 }
  0xa0   : > { %p1214_p4 = pneg %p1213_p2  ;;  %p1220_p5 = por %p1219_p7, %p1218_p0 }
  0xa2   : > { %p1221_p11 = pnand %p1220_p5, %p1214_p4 }
  0xa4   : > { %1224 = shalt.err (!%p1221_p11)
}
  0xa5   : > { %994 = dma.hbm_to_vmem [thread:$0]  (!%p1731_p3), %s1740_s17, 2048, %s1735_s12, %s1744_s0, %s2107_s26, %s2107_s26, %s2118_s21  }
  0xa6   : > { %p2129_p10 = scmp.ne.s32.totalorder %s2104_s5, 0 }
  0xa7   : > { %s2130_s24 = sld [smem:[#allocation27_spill]] (!%p2129_p10) }
  0xa8   : > { %363 = sbr.rel (%p2129_p10) target bundleno = 445 (0x1bd), region = 36  ;;  %s2131_s10 = sld [smem:[#allocation30_spill]] (!%p2129_p10) }
  0xad   : > { %s1771_s18 = sand.u32 1, %s2130_s24  }
  0xae   : > { %s1774_s19 = sshll.u32 %s1771_s18, 7  ;;  %s366_s27 = scalar_lea.sflag [#allocation5], %s1771_s18 }
  0xaf   : > { %s1778_s25 = scalar_lea.vmem [#allocation4], %s1774_s19  ;;  %p2132_p11 = scmp.ne.s32.totalorder %s2131_s10, 0 }
  0xb1   : > { %1328 = dma.done.wait (%p2132_p11), %s366_s27, 2048  }
  0xb2   : > { %1330 = vsyncadd (%p2132_p11), %s366_s27, 4294965248  ;;  %s374_s5 = sand.u32 1, %s1514_s15   ;;  %s1786_s21 = scalar_lea.vmem [#allocation7], %s1774_s19 }
  0xb3   : > { %s375_s26 = scalar_lea.sflag [#allocation8], %s374_s5 }
  0xb4   : > { %1332 = dma.done.wait (%p2132_p11), %s375_s26, 2048  }
  0xb5   : > { %1334 = vsyncadd (%p2132_p11), %s375_s26, 4294965248  ;;  %s385_s12 = sand.u32 1, %s1369_s30   ;;  %p2133_p3 = scmp.ne.s32.totalorder %s2111_s2, 0 }
  0xb6   : > { %s942_s17 = sshll.u32 %s385_s12, 7 }
  0xb7   : > { %s1793_s0 = scalar_lea.vmem [#allocation9], %s942_s17 }
  0xb8   : > { %1336 = dma.done.wait (%p2133_p3), %s375_s26, 2048  }
  0xb9   : > { %1338 = vsyncadd (%p2133_p3), %s375_s26, 4294965248  ;;  %s392_s15 = sand.u32 1, %s1357_s28   ;;  %p2134_p1 = scmp.ne.s32.totalorder %s2121_s1, 0 }
  0xba   : > { %s943_s23 = sshll.u32 %s392_s15, 7  ;;  %s393_s9 = scalar_lea.sflag [#allocation11], %s392_s15 }
  0xbb   : > { %s1800_s20 = scalar_lea.vmem [#allocation10], %s943_s23 }
  0xbc   : > { %1340 = dma.done.wait (%p2134_p1), %s393_s9, 2048  }
  0xbd   : > { %1342 = vsyncadd (%p2134_p1), %s393_s9, 4294965248  ;;  %v481_v0 = vld [vmem:[%s1786_s21] sm:$0xff]  ;;  %v482_v1 = vld [vmem:[%s1786_s21 + $0x8] sm:$0xff]  ;;  %s1859_s2 = scalar_lea.vmem [#allocation12], %s1774_s19  ;;  %s1914_s1 = scalar_lea.vmem [#allocation13], %s1774_s19 }
  0xbe   : > { %v465_v2 = vld [vmem:[%s1778_s25] sm:$0xff]  ;;  %v483_v3 = vld [vmem:[%s1786_s21 + $0x10] sm:$0xff]  ;;  %v484_v4 = vld [vmem:[%s1786_s21 + $0x18] sm:$0xff]  ;;  %vm529_vm0 = vcmp.gt.f32.partialorder %v481_v0, 0.0  ;;  %vm530_vm1 = vcmp.gt.f32.partialorder %v482_v1, 0.0  ;;  %s2135_s22 = sld [smem:[#allocation28_spill]] }
  0xbf   : > { %v485_v5 = vld [vmem:[%s1786_s21 + $0x20] sm:$0xff]  ;;  %v466_v6 = vld [vmem:[%s1778_s25 + $0x8] sm:$0xff]  ;;  %v467_v7 = vld [vmem:[%s1778_s25 + $0x10] sm:$0xff]  ;;  %vm531_vm2 = vcmp.gt.f32.partialorder %v483_v3, 0.0  ;;  %vm532_vm3 = vcmp.gt.f32.partialorder %v484_v4, 0.0  ;;  %s2136_s16 = sld [smem:[#allocation31_spill]] }
  0xc0   : > { %v468_v8 = vld [vmem:[%s1778_s25 + $0x18] sm:$0xff]  ;;  %v486_v9 = vld [vmem:[%s1786_s21 + $0x28] sm:$0xff]  ;;  %v487_v10 = vld [vmem:[%s1786_s21 + $0x30] sm:$0xff]  ;;  %vm533_vm4 = vcmp.gt.f32.partialorder %v485_v5, 0.0  ;;  %s679_s10 = sshll.u32 %s1859_s2, 4  ;;  %s653_s26 = scalar_lea.sflag [#allocation6], %s1771_s18  ;;  %s1945_s10 = int_to_ptr.vmem [resolvable:$true] %s679_s10 }
  0xc1   : > { %v1818_v11 = vld [vmem:[%s1786_s21 + $0x38] sm:$0xff]  ;;  %v469_v12 = vld [vmem:[%s1778_s25 + $0x20] sm:$0xff]  ;;  %v470_v13 = vld [vmem:[%s1778_s25 + $0x28] sm:$0xff]  ;;  %vm534_vm5 = vcmp.gt.f32.partialorder %v486_v9, 0.0  ;;  %vm535_vm6 = vcmp.gt.f32.partialorder %v487_v10, 0.0  ;;  %s1406_s12 = smov [#allocation12]  }
  0xc2   : > { %v471_v14 = vld [vmem:[%s1778_s25 + $0x30] sm:$0xff]  ;;  %v489_v15 = vld [vmem:[%s1786_s21 + $0x40] sm:$0xff]  ;;  %v490_v16 = vld [vmem:[%s1786_s21 + $0x48] sm:$0xff]  ;;  %vm536_vm7 = vcmp.gt.f32.partialorder %v1818_v11, 0.0  ;;  %s1229_s17 = sshll.u32 %s1406_s12, 4  ;;  %s1230_s17 = int_to_ptr.vmem [resolvable:$false] %s1229_s17 }
  0xc3   : > { %v1826_v17 = vld [vmem:[%s1786_s21 + $0x50] sm:$0xff]  ;;  %v472_v18 = vld [vmem:[%s1778_s25 + $0x38] sm:$0xff]  ;;  %v473_v19 = vld [vmem:[%s1778_s25 + $0x40] sm:$0xff]  ;;  %vm537_vm8 = vcmp.gt.f32.partialorder %v489_v15, 0.0  ;;  %vm538_vm9 = vcmp.gt.f32.partialorder %v490_v16, 0.0  ;;  %p1232_p13 = scmp.lt.s32.totalorder %s1945_s10, %s1230_s17 }
  0xc4   : > { %v474_v20 = vld [vmem:[%s1778_s25 + $0x48] sm:$0xff]  ;;  %v492_v21 = vld [vmem:[%s1786_s21 + $0x58] sm:$0xff]  ;;  %v493_v22 = vld [vmem:[%s1786_s21 + $0x60] sm:$0xff]  ;;  %vm539_vm10 = vcmp.gt.f32.partialorder %v1826_v17, 0.0  ;;  %s958_s24 = sshll.u32 %s2135_s22, 11 }
  0xc5   : > { %v1834_v23 = vld [vmem:[%s1786_s21 + $0x68] sm:$0xff]  ;;  %v475_v24 = vld [vmem:[%s1778_s25 + $0x50] sm:$0xff]  ;;  %v476_v25 = vld [vmem:[%s1778_s25 + $0x58] sm:$0xff]  ;;  %vm540_vm11 = vcmp.gt.f32.partialorder %v492_v21, 0.0  ;;  %vm541_vm12 = vcmp.gt.f32.partialorder %v493_v22, 0.0  ;;  %p2138_p8 = scmp.ne.s32.totalorder %s2136_s16, 0 }
  0xc6   : > { %v477_v26 = vld [vmem:[%s1778_s25 + $0x60] sm:$0xff]  ;;  %v495_v27 = vld [vmem:[%s1786_s21 + $0x70] sm:$0xff]  ;;  %v496_v28 = vld [vmem:[%s1786_s21 + $0x78] sm:$0xff]  ;;  %vm542_vm13 = vcmp.gt.f32.partialorder %v1834_v23, 0.0  ;;  %s1225_s21 = scalar_lea.vmem %s1945_s10, 2048 }
  0xc7   : > { %v497_v29 = vld [vmem:[%s1793_s0] sm:$0xff]  ;;  %v478_v30 = vld [vmem:[%s1778_s25 + $0x68] sm:$0xff]  ;;  %v479_v31 = vld [vmem:[%s1778_s25 + $0x70] sm:$0xff]  ;;  %vm543_vm14 = vcmp.gt.f32.partialorder %v495_v27, 0.0  ;;  %vm544_vm15 = vcmp.gt.f32.partialorder %v496_v28, 0.0  ;;  %p1226_p6 = scmp.ne.s32.totalorder %s1945_s10, %s1225_s21 }
  0xc8   : > { %v480_v32 = vld [vmem:[%s1778_s25 + $0x78] sm:$0xff]  ;;  %v498_v33 = vld [vmem:[%s1793_s0 + $0x8] sm:$0xff]  ;;  %v499_v34 = vld [vmem:[%s1793_s0 + $0x10] sm:$0xff]  ;;  %v545_v36 = vsel %vm529_vm0, %v465_v2, %v497_v29  ;;  %s2137_s25 = sld [smem:[#allocation36_spill]] }
  0xc9   : > { %v500_v35 = vld [vmem:[%s1793_s0 + $0x18] sm:$0xff]  ;;  %v501_v37 = vld [vmem:[%s1793_s0 + $0x20] sm:$0xff]  ;;  %v502_v38 = vld [vmem:[%s1793_s0 + $0x28] sm:$0xff]  ;;  %v546_v40 = vsel %vm530_vm1, %v466_v6, %v498_v33  ;;  %v547_v41 = vsel %vm531_vm2, %v467_v7, %v499_v34  ;;  %577 = vst [vmem:[%s1859_s2] sm:$0xff] %v545_v36  ;;  %p1227_p9 = pnand %p1226_p6, %p2138_p8 }
  0xca   : > { %v503_v39 = vld [vmem:[%s1793_s0 + $0x30] sm:$0xff]  ;;  %v548_v42 = vsel %vm532_vm3, %v468_v8, %v500_v35  ;;  %v504_v43 = vld [vmem:[%s1793_s0 + $0x38] sm:$0xff]  ;;  %v505_v44 = vld [vmem:[%s1793_s0 + $0x40] sm:$0xff]  ;;  %v549_v46 = vsel %vm533_vm4, %v469_v12, %v501_v37  ;;  %v550_v47 = vsel %vm534_vm5, %v470_v13, %v502_v38  ;;  %578 = vst [vmem:[%s1859_s2 + $0x8] sm:$0xff] %v546_v40 }
  0xcb   : > { %v506_v45 = vld [vmem:[%s1793_s0 + $0x48] sm:$0xff]  ;;  %v551_v48 = vsel %vm535_vm6, %v471_v14, %v503_v39  ;;  %579 = vst [vmem:[%s1859_s2 + $0x10] sm:$0xff] %v547_v41  ;;  %580 = vst [vmem:[%s1859_s2 + $0x18] sm:$0xff] %v548_v42  ;;  %v507_v49 = vld [vmem:[%s1793_s0 + $0x50] sm:$0xff]  ;;  %v552_v52 = vsel %vm536_vm7, %v472_v18, %v504_v43  ;;  %v553_v53 = vsel %vm537_vm8, %v473_v19, %v505_v44  ;;  %p1228_p12 = pneg %p1227_p9 }
  0xcc   : > { %v508_v50 = vld [vmem:[%s1793_s0 + $0x58] sm:$0xff]  ;;  %v509_v51 = vld [vmem:[%s1793_s0 + $0x60] sm:$0xff]  ;;  %v554_v54 = vsel %vm538_vm9, %v474_v20, %v506_v45  ;;  %581 = vst [vmem:[%s1859_s2 + $0x20] sm:$0xff] %v549_v46  ;;  %582 = vst [vmem:[%s1859_s2 + $0x28] sm:$0xff] %v550_v47  ;;  %v555_v58 = vsel %vm539_vm10, %v475_v24, %v507_v49 }
  0xcd   : > { %583 = vst [vmem:[%s1859_s2 + $0x30] sm:$0xff] %v551_v48  ;;  %v510_v55 = vld [vmem:[%s1793_s0 + $0x68] sm:$0xff]  ;;  %v511_v56 = vld [vmem:[%s1793_s0 + $0x70] sm:$0xff]  ;;  %v512_v57 = vld [vmem:[%s1793_s0 + $0x78] sm:$0xff]  ;;  %v556_v59 = vsel %vm540_vm11, %v476_v25, %v508_v50  ;;  %v557_v60 = vsel %vm541_vm12, %v477_v26, %v509_v51  ;;  %s1231_s0 = scalar_lea.vmem %s1230_s17, 4096 }
  0xce   : > { %584 = vst [vmem:[%s1859_s2 + $0x38] sm:$0xff] %v552_v52  ;;  %585 = vst [vmem:[%s1859_s2 + $0x40] sm:$0xff] %v553_v53  ;;  %v513_v61 = vld [vmem:[%s1800_s20] sm:$0xff]  ;;  %v514_v62 = vld [vmem:[%s1800_s20 + $0x8] sm:$0xff]  ;;  %v558_v0 = vsel %vm542_vm13, %v478_v30, %v510_v55  ;;  %v559_v1 = vsel %vm543_vm14, %v479_v31, %v511_v56  ;;  %v560_v2 = vsel %vm544_vm15, %v480_v32, %v512_v57  ;;  %s1943_s5 = scalar_lea.hbm %s2137_s25, %s958_s24  ;;  %p1233_p2 = scmp.lt.s32.totalorder %s1231_s0, %s1225_s21 }
  0xcf   : > { %586 = vst [vmem:[%s1859_s2 + $0x48] sm:$0xff] %v554_v54  ;;  %v515_v63 = vld [vmem:[%s1800_s20 + $0x10] sm:$0xff]  ;;  %587 = vst [vmem:[%s1859_s2 + $0x50] sm:$0xff] %v555_v58  ;;  %v516_v3 = vld [vmem:[%s1800_s20 + $0x18] sm:$0xff]  ;;  %v561_v6 = vsub.f32 %v545_v36, %v513_v61  ;;  %v562_v7 = vsub.f32 %v546_v40, %v514_v62 }
  0xd0   : > { %588 = vst [vmem:[%s1859_s2 + $0x58] sm:$0xff] %v556_v59  ;;  %589 = vst [vmem:[%s1859_s2 + $0x60] sm:$0xff] %v557_v60  ;;  %v517_v4 = vld [vmem:[%s1800_s20 + $0x20] sm:$0xff]  ;;  %v518_v5 = vld [vmem:[%s1800_s20 + $0x28] sm:$0xff]  ;;  %v563_v8 = vsub.f32 %v547_v41, %v515_v63  ;;  %v564_v12 = vsub.f32 %v548_v42, %v516_v3  ;;  %p1234_p4 = por %p1233_p2, %p1232_p13 }
  0xd1   : > { %590 = vst [vmem:[%s1859_s2 + $0x68] sm:$0xff] %v558_v0  ;;  %591 = vst [vmem:[%s1859_s2 + $0x70] sm:$0xff] %v559_v1  ;;  %v519_v9 = vld [vmem:[%s1800_s20 + $0x30] sm:$0xff]  ;;  %v520_v10 = vld [vmem:[%s1800_s20 + $0x38] sm:$0xff]  ;;  %v565_v13 = vsub.f32 %v549_v46, %v517_v4  ;;  %v566_v14 = vsub.f32 %v550_v47, %v518_v5  ;;  %v609_v27 = vmul.f32 %v561_v6, %v561_v6 }
  0xd2   : > { %592 = vst [vmem:[%s1859_s2 + $0x78] sm:$0xff] %v560_v2  ;;  %v521_v11 = vld [vmem:[%s1800_s20 + $0x40] sm:$0xff]  ;;  %v522_v15 = vld [vmem:[%s1800_s20 + $0x48] sm:$0xff]  ;;  %v523_v16 = vld [vmem:[%s1800_s20 + $0x50] sm:$0xff]  ;;  %v567_v18 = vsub.f32 %v551_v48, %v519_v9  ;;  %v568_v19 = vsub.f32 %v552_v52, %v520_v10  ;;  %v610_v32 = vmul.f32 %v562_v7, %v562_v7  ;;  %v611_v34 = vmul.f32 %v563_v8, %v563_v8  ;;  %p1235_p0 = pnand %p1234_p4, %p1228_p12 }
  0xd3   : > { %v524_v17 = vld [vmem:[%s1800_s20 + $0x58] sm:$0xff]  ;;  %v569_v20 = vsub.f32 %v553_v53, %v521_v11  ;;  %593 = vst [vmem:[%s1914_s1] sm:$0xff] %v561_v6  ;;  %594 = vst [vmem:[%s1914_s1 + $0x8] sm:$0xff] %v562_v7  ;;  %v525_v21 = vld [vmem:[%s1800_s20 + $0x60] sm:$0xff]  ;;  %v570_v24 = vsub.f32 %v554_v54, %v522_v15  ;;  %v571_v25 = vsub.f32 %v555_v58, %v523_v16 }
  0xd4   : > { %595 = vst [vmem:[%s1914_s1 + $0x10] sm:$0xff] %v563_v8  ;;  %v526_v22 = vld [vmem:[%s1800_s20 + $0x68] sm:$0xff]  ;;  %v527_v23 = vld [vmem:[%s1800_s20 + $0x70] sm:$0xff]  ;;  %v572_v26 = vsub.f32 %v556_v59, %v524_v17  ;;  %596 = vst [vmem:[%s1914_s1 + $0x18] sm:$0xff] %v564_v12  ;;  %v573_v29 = vsub.f32 %v557_v60, %v525_v21  ;;  %v612_v35 = vmul.f32 %v564_v12, %v564_v12 }
  0xd5   : > { %597 = vst [vmem:[%s1914_s1 + $0x20] sm:$0xff] %v565_v13  ;;  %598 = vst [vmem:[%s1914_s1 + $0x28] sm:$0xff] %v566_v14  ;;  %v528_v28 = vld [vmem:[%s1800_s20 + $0x78] sm:$0xff]  ;;  %v574_v30 = vsub.f32 %v558_v0, %v526_v22  ;;  %v575_v31 = vsub.f32 %v559_v1, %v527_v23  ;;  %v625_v36 = vadd.f32 %v610_v32, %v609_v27 }
  0xd6   : > { %599 = vst [vmem:[%s1914_s1 + $0x30] sm:$0xff] %v567_v18  ;;  %600 = vst [vmem:[%s1914_s1 + $0x38] sm:$0xff] %v568_v19  ;;  %v576_v33 = vsub.f32 %v560_v2, %v528_v28  ;;  %v613_v37 = vmul.f32 %v565_v13, %v565_v13  ;;  %v614_v39 = vmul.f32 %v566_v14, %v566_v14 }
  0xd7   : > { %601 = vst [vmem:[%s1914_s1 + $0x40] sm:$0xff] %v569_v20  ;;  %602 = vst [vmem:[%s1914_s1 + $0x48] sm:$0xff] %v570_v24  ;;  %v626_v38 = vadd.f32 %v625_v36, %v611_v34  ;;  %v615_v41 = vmul.f32 %v567_v18, %v567_v18  ;;  %v616_v43 = vmul.f32 %v568_v19, %v568_v19 }
  0xd8   : > { %603 = vst [vmem:[%s1914_s1 + $0x50] sm:$0xff] %v571_v25  ;;  %604 = vst [vmem:[%s1914_s1 + $0x58] sm:$0xff] %v572_v26  ;;  %v617_v45 = vmul.f32 %v569_v20, %v569_v20  ;;  %v618_v47 = vmul.f32 %v570_v24, %v570_v24  ;;  %v619_v49 = vmul.f32 %v571_v25, %v571_v25 }
  0xd9   : > { %605 = vst [vmem:[%s1914_s1 + $0x60] sm:$0xff] %v573_v29  ;;  %606 = vst [vmem:[%s1914_s1 + $0x68] sm:$0xff] %v574_v30  ;;  %v627_v40 = vadd.f32 %v626_v38, %v612_v35  ;;  %v620_v51 = vmul.f32 %v572_v26, %v572_v26  ;;  %v621_v53 = vmul.f32 %v573_v29, %v573_v29 }
  0xda   : > { %607 = vst [vmem:[%s1914_s1 + $0x70] sm:$0xff] %v575_v31  ;;  %608 = vst [vmem:[%s1914_s1 + $0x78] sm:$0xff] %v576_v33  ;;  %v622_v55 = vmul.f32 %v574_v30, %v574_v30  ;;  %v623_v57 = vmul.f32 %v575_v31, %v575_v31  ;;  %v624_v59 = vmul.f32 %v576_v33, %v576_v33 }
  0xdb   : > { %v628_v42 = vadd.f32 %v627_v40, %v613_v37 }
  0xdd   : > { %v629_v44 = vadd.f32 %v628_v42, %v614_v39 }
  0xdf   : > { %v630_v46 = vadd.f32 %v629_v44, %v615_v41 }
  0xe1   : > { %v631_v48 = vadd.f32 %v630_v46, %v616_v43 }
  0xe3   : > { %v632_v50 = vadd.f32 %v631_v48, %v617_v45 }
  0xe5   : > { %v633_v52 = vadd.f32 %v632_v50, %v618_v47 }
  0xe7   : > { %v634_v54 = vadd.f32 %v633_v52, %v619_v49 }
  0xe9   : > { %v635_v56 = vadd.f32 %v634_v54, %v620_v51 }
  0xeb   : > { %v636_v58 = vadd.f32 %v635_v56, %v621_v53 }
  0xed   : > { %v637_v60 = vadd.f32 %v636_v58, %v622_v55 }
  0xef   : > { %v638_v61 = vadd.f32 %v637_v60, %v623_v57 }
  0xf1   : > { %v639_v62 = vadd.f32 %v638_v61, %v624_v59 }
  0xf3   : > { %640 = vadd.xlane.f32.xlu0 %v639_v62 }
  0xf4   : > { %1238 = shalt.err (!%p1235_p0)
}
  0xf5   : > { %s1239_s15 = scalar_lea.hbm %s1943_s5, 2048  ;;  %s1243_s20 = scalar_lea.hbm %s2137_s25, 4096 }
  0xf6   : > { %p1240_p7 = scmp.ne.s32.totalorder %s1943_s5, %s1239_s15  ;;  %p1244_p11 = scmp.lt.s32.totalorder %s1943_s5, %s2137_s25 }
  0xf7   : > { %p1245_p3 = scmp.lt.s32.totalorder %s1243_s20, %s1239_s15 }
  0xf8   : > { %p1241_p5 = pnand %p1240_p7, %p2138_p8 }
  0xf9   : > { %p1246_p1 = por %p1245_p3, %p1244_p11 }
  0xfa   : > { %p1242_p10 = pneg %p1241_p5 }
  0xfc   : > { %p1247_p6 = pnand %p1246_p1, %p1242_p10 }
  0xfe   : > { %1250 = shalt.err (!%p1247_p6)
}
  0xff   : > { %s1407_s27 = smov 128   ;;  %s1408_s21 = smov 8  }
 0x100   : > { %974 = dma.vmem_to_hbm [thread:$0]  (%p2138_p8), %s1945_s10, 2048, %s1943_s5, %s653_s26, %s1407_s27, %s1407_s27, %s1408_s21  }
 0x101   : > { %s2139_s0 = sld [smem:[#allocation37_spill]]  ;;  %s697_s9 = sshll.u32 %s1914_s1, 4  ;;  %s1981_s9 = int_to_ptr.vmem [resolvable:$true] %s697_s9 }
 0x102   : > { %s658_s20 = scalar_lea.sflag [#allocation14], %s1771_s18  ;;  %s1251_s2 = scalar_lea.vmem %s1981_s9, 2048 }
 0x103   : > { %p1252_p9 = scmp.ne.s32.totalorder %s1981_s9, %s1251_s2  ;;  %s1409_s19 = smov [#allocation13]  }
 0x104   : > { %s1255_s10 = sshll.u32 %s1409_s19, 4  ;;  %s1256_s10 = int_to_ptr.vmem [resolvable:$false] %s1255_s10 }
 0x105   : > { %p1253_p12 = pnand %p1252_p9, %p2138_p8  ;;  %s1257_s5 = scalar_lea.vmem %s1256_s10, 4096 }
 0x106   : > { %p1258_p2 = scmp.lt.s32.totalorder %s1981_s9, %s1256_s10  ;;  %p1259_p4 = scmp.lt.s32.totalorder %s1257_s5, %s1251_s2 }
 0x107   : > { %s2140_s15 = smov %s2139_s0  ;;  %s1978_s23 = scalar_lea.hbm %s2139_s0, %s958_s24 }
 0x108   : > { %p1254_p13 = pneg %p1253_p12  ;;  %p1260_p0 = por %p1259_p4, %p1258_p2 }
 0x10a   : > { %p1261_p7 = pnand %p1260_p0, %p1254_p13 }
 0x10c   : > { %1264 = shalt.err (!%p1261_p7)
}
 0x10d   : > { %s1265_s1 = scalar_lea.hbm %s1978_s23, 2048  ;;  %s1269_s26 = scalar_lea.hbm %s2140_s15, 4096 }
 0x10e   : > { %p1266_p5 = scmp.ne.s32.totalorder %s1978_s23, %s1265_s1  ;;  %p1270_p3 = scmp.lt.s32.totalorder %s1978_s23, %s2140_s15 }
 0x10f   : > { %p1271_p1 = scmp.lt.s32.totalorder %s1269_s26, %s1265_s1 }
 0x110   : > { %p1267_p10 = pnand %p1266_p5, %p2138_p8 }
 0x111   : > { %p1272_p6 = por %p1271_p1, %p1270_p3 }
 0x112   : > { %p1268_p11 = pneg %p1267_p10 }
 0x114   : > { %p1273_p9 = pnand %p1272_p6, %p1268_p11 }
 0x116   : > { %1276 = shalt.err (!%p1273_p9)
}
 0x117   : > { %975 = dma.vmem_to_hbm [thread:$0]  (%p2138_p8), %s1981_s9, 2048, %s1978_s23, %s658_s20, %s1407_s27, %s1407_s27, %s1408_s21   ;;  %vm650_vm0 = vcmask 0  }
 0x118   : > { %p459_p12 = scmp.lt.s32.totalorder %s2135_s22, 1  ;;  %s2141_s2 = sld [smem:[#allocation38_spill]] }
 0x11a   : > { %s2170_s22 = smov (!%p459_p12, %s2135_s22), 1 }
 0x11e   : > { %s464_s19 = scalar_lea.vmem %s2141_s2, %s2170_s22 }
 0x17c   : > { %v641_v63 = vpop.xlane.xlu0 %640 }
 0x17d   : > { %v642_v0 = vrot.slane %v641_v63, 4 }
 0x17f   : > { %v643_v1 = vadd.f32 %v642_v0, %v641_v63 }
 0x181   : > { %v644_v2 = vrot.slane %v643_v1, 2 }
 0x183   : > { %v645_v3 = vadd.f32 %v644_v2, %v643_v1 }
 0x185   : > { %v646_v4 = vrot.slane %v645_v3, 1 }
 0x187   : > { %v647_v5 = vadd.f32 %v646_v4, %v645_v3 }
 0x189   : > { %960 = vpush %v647_v5 }
 0x1ba   : > { %s961_s10 = spop %960 }
 0x1bb   : > { %v649_v6 = vstv %s961_s10 }
 0x1bc   : > { %651 = vst.msk [vmem:[%s464_s19] sm:$0x1] %vm650_vm0, %v649_v6 }
 0x1bd PF: > { %s2142_s27 = sld [smem:[#allocation26_spill]]  ;;  %p2145_p13 = scmp.ge.s32.totalorder %s1397_s14, 2 }
 0x1be   : > { %s2143_s21 = sld [smem:[#allocation33_spill]] }
 0x1c3   : > { %s715_s23 = sand.u32 1, %s2142_s27  }
 0x1c4   : > { %p2144_p8 = scmp.ne.s32.totalorder %s2143_s21, 0  ;;  %s716_s9 = scalar_lea.sflag [#allocation6], %s715_s23 }
 0x1c6   : > { %p996_p2 = pnand %p2145_p13, %p2144_p8 }
 0x1c8   : > { %p997_p4 = pneg %p996_p2 }
 0x1ca   : > { %1344 = dma.done.wait (%p997_p4), %s716_s9, 2048  }
 0x1cb   : > { %1346 = vsyncadd (%p997_p4), %s716_s9, 4294965248  ;;  %s725_s20 = scalar_lea.sflag [#allocation14], %s715_s23 }
 0x1cc   : > { %1348 = dma.done.wait (%p997_p4), %s725_s20, 2048  }
 0x1cd   : > { %1350 = vsyncadd (%p997_p4), %s725_s20, 4294965248  ;;  %s37_s14 = sadd.s32 1, %s1397_s14   ;;  %s2146_s9 = sld [smem:[#allocation27_spill]] }
 0x1ce   : > { %p34_p0 = scmp.ge.s32.totalorder %s37_s14, 4   ;;  %s2147_s22 = sld [smem:[#allocation32_spill]] }
 0x1cf   : > { %s2148_s5 = sld [smem:[#allocation29_spill]]  ;;  %s2149_s27 = smov %s1357_s28 }
 0x1d0   : > { %s2150_s28 = smov %s1361_s29  ;;  %s2151_s29 = smov %s1718_s7 }
 0x1d1   : > { %s2152_s0 = smov %s1369_s30  ;;  %s2153_s30 = smov %s1373_s8 }
 0x1d2   : > { %s2154_s8 = smov %s1643_s6  ;;  %s2155_s10 = smov %s1385_s11 }
 0x1d3   : > { %s2157_s12 = smov %s1393_s13  ;;  %36 = sbr.rel (!%p34_p0) target bundleno = 25 (0x19), region = 147 }
 0x1d4   : > { %s2156_s11 = smov %s2147_s22 }
 0x1d5   : > { %s2158_s13 = smov %s2148_s5 }
 0x1d8   :  { %739 = vsyncpa [#allocation5], 1 }
 0x1d9   :  { %741 = vsyncpa [#allocation5 + $0x1], 1 }
 0x1da   :  { %742 = vsyncpa [#allocation8], 1 }
 0x1db   :  { %744 = vsyncpa [#allocation8 + $0x1], 1 }
 0x1dc   :  { %745 = vsyncpa [#allocation11], 1 }
 0x1dd   :  { %747 = vsyncpa [#allocation11 + $0x1], 1 }
 0x1de   :  { %748 = vsyncpa [#allocation6], 1 }
 0x1df   :  { %750 = vsyncpa [#allocation6 + $0x1], 1 }
 0x1e0   :  { %751 = vsyncpa [#allocation14], 1 }
 0x1e1   :  { %753 = vsyncpa [#allocation14 + $0x1], 1 }

</bundles_post_ra>
